<compile_context>
chip_gen: v7x
topology: tpu7x:2x2x1
jax: 0.10.0
libtpu: 0.0.40
codegen_flags: <defaults>
</compile_context>

<pallas_src>
import jax
import jax.numpy as jnp
from jax.experimental import pallas as pl
from jax.experimental.pallas import tpu as pltpu


def _round_up(a, b):
    return ((a + b - 1) // b) * b


def _stats_kernel(x_ref, sum_ref, sq_ref):
    # Grid: (row_tiles, hw_tiles). HW axis is last ("arbitrary") so the
    # (tile_rows, 1) output blocks stay VMEM-resident and act as accumulators.
    @pl.when(pl.program_id(1) == 0)
    def _():
        sum_ref[...] = jnp.zeros_like(sum_ref)
        sq_ref[...] = jnp.zeros_like(sq_ref)

    x = x_ref[...].astype(jnp.float32)
    # One-pass sum / sum-of-squares accumulated in f32 (XLU lane reductions).
    sum_ref[...] += jnp.sum(x, axis=-1, keepdims=True)
    sq_ref[...] += jnp.sum(x * x, axis=-1, keepdims=True)


def _apply_kernel(x_ref, scale_ref, offset_ref, o_ref):
    # Pure streaming FMA: out = x * scale + offset (scale/offset per row).
    x = x_ref[...].astype(jnp.float32)
    o_ref[...] = (x * scale_ref[...] + offset_ref[...]).astype(o_ref.dtype)


def advstyle_forward(x, adv_mean_std, adv_std_std, noise_mu, noise_sig,
                     *, eps=1e-6, mix_weight=1.0, apply_mix=True):
    """x: (B, C, H, W) NCHW. adv_*_std: (C,). noise_*: (B, C)."""
    if not apply_mix:
        # random.random() < 1/2 branch: identity.
        return x

    B, C, H, W = x.shape
    HW = H * W
    R = B * C
    out_dtype = x.dtype

    # 2-D layout: rows (B*C) -> sublanes, spatial (H*W) -> lanes.
    x2 = x.reshape(R, HW)

    # Lane-dense tiles: HW tile multiple of 128 (up to 2048), rows multiple of 8
    # (up to 256) -> ~2 MiB f32 tiles; fits v7x's 32 MiB scoped VMEM with
    # double-buffered in+out.
    tile_hw = min(_round_up(HW, 128), 2048)
    tile_rows = min(_round_up(R, 8), 256)
    HW_pad = _round_up(HW, tile_hw)
    R_pad = _round_up(R, tile_rows)

    if (R_pad, HW_pad) != (R, HW):
        # Zero-padding keeps sum / sum-of-squares exact; padded rows/cols are
        # sliced off (stats) or cropped (output) afterwards.
        x2p = jnp.zeros((R_pad, HW_pad), x2.dtype).at[:R, :HW].set(x2)
    else:
        x2p = x2

    n_row = R_pad // tile_rows
    n_hw = HW_pad // tile_hw

    # ---- Pass 1: per-row sum & sum-of-squares -------------------------------
    sums, sqs = pl.pallas_call(
        _stats_kernel,
        out_shape=(jax.ShapeDtypeStruct((R_pad, 1), jnp.float32),
                   jax.ShapeDtypeStruct((R_pad, 1), jnp.float32)),
        grid=(n_row, n_hw),
        in_specs=[pl.BlockSpec((tile_rows, tile_hw), lambda i, k: (i, k))],
        out_specs=(pl.BlockSpec((tile_rows, 1), lambda i, k: (i, 0)),
                   pl.BlockSpec((tile_rows, 1), lambda i, k: (i, 0))),
        compiler_params=pltpu.CompilerParams(
            dimension_semantics=("parallel", "arbitrary")),
    )(x2p)

    # ---- O(B*C) post-processing in plain JAX (off the roofline path) --------
    s = sums[:R, 0].reshape(B, C)
    sq = sqs[:R, 0].reshape(B, C)
    mu = s / HW
    var = (sq - s * mu) / (HW - 1)            # unbiased, matches torch.var
    var = jnp.maximum(var, 0.0)               # guard tiny negative rounding
    sig = jnp.sqrt(var + eps)
    inv_sig = 1.0 / sig

    var_mu = jnp.var(mu, axis=0, ddof=1)      # (C,) unbiased over batch
    var_sig = jnp.var(sig, axis=0, ddof=1)
    sig_mu = jnp.sqrt(var_mu + eps)
    sig_sig = jnp.sqrt(var_sig + eps)

    # GradientReverseLayer is identity in the forward pass.
    q_mu = adv_mean_std.reshape(C).astype(jnp.float32)
    q_sig = adv_std_std.reshape(C).astype(jnp.float32)

    used_sig_mu = (q_mu / jnp.linalg.norm(q_mu)
                   * jnp.linalg.norm(sig_mu) * mix_weight)     # (C,)
    used_sig_sig = (q_sig / jnp.linalg.norm(q_sig)
                    * jnp.linalg.norm(sig_sig) * mix_weight)   # (C,)

    new_mu = noise_mu.astype(jnp.float32) * used_sig_mu + mu    # (B, C)
    new_sig = noise_sig.astype(jnp.float32) * used_sig_sig + sig

    # out = (x - mu)/sig * new_sig + new_mu  ==  x*scale + offset
    scale = new_sig * inv_sig
    offset = new_mu - mu * scale

    scale_r = jnp.zeros((R_pad, 1), jnp.float32).at[:R, 0].set(scale.reshape(R))
    offset_r = jnp.zeros((R_pad, 1), jnp.float32).at[:R, 0].set(offset.reshape(R))

    # ---- Pass 2: fused streaming apply ---------------------------------------
    out = pl.pallas_call(
        _apply_kernel,
        out_shape=jax.ShapeDtypeStruct((R_pad, HW_pad), out_dtype),
        grid=(n_row, n_hw),
        in_specs=[pl.BlockSpec((tile_rows, tile_hw), lambda i, j: (i, j)),
                  pl.BlockSpec((tile_rows, 1), lambda i, j: (i, 0)),
                  pl.BlockSpec((tile_rows, 1), lambda i, j: (i, 0))],
        out_specs=pl.BlockSpec((tile_rows, tile_hw), lambda i, j: (i, j)),
        compiler_params=pltpu.CompilerParams(
            dimension_semantics=("parallel", "parallel")),
    )(x2p, scale_r, offset_r)

    if (R_pad, HW_pad) != (R, HW):
        out = out[:R, :HW]
    return out.reshape(B, C, H, W)


def _reference_jax(x, adv_mean_std, adv_std_std, noise_mu, noise_sig,
                   eps=1e-6, mix_weight=1.0):
    """Pure-JAX reference mirroring the PyTorch forward (sanity check)."""
    B, C, H, W = x.shape
    xf = x.astype(jnp.float32)
    mu = xf.mean(axis=(2, 3), keepdims=True)
    var = xf.var(axis=(2, 3), keepdims=True, ddof=1)
    sig = jnp.sqrt(var + eps)
    x_normed = (xf - mu) / sig
    var_mu = mu.var(axis=0, keepdims=True, ddof=1)
    var_sig = sig.var(axis=0, keepdims=True, ddof=1)
    sig_mu = jnp.sqrt(var_mu + eps)
    sig_sig = jnp.sqrt(var_sig + eps)
    q_mu = adv_mean_std.reshape(1, C, 1, 1)
    q_sig = adv_std_std.reshape(1, C, 1, 1)
    used_mu = q_mu / jnp.linalg.norm(q_mu, axis=1, keepdims=True) \
        * jnp.linalg.norm(sig_mu, axis=1, keepdims=True) * mix_weight
    used_sig = q_sig / jnp.linalg.norm(q_sig, axis=1, keepdims=True) \
        * jnp.linalg.norm(sig_sig, axis=1, keepdims=True) * mix_weight
    new_mu = noise_mu.reshape(B, C, 1, 1) * used_mu + mu
    new_sig = noise_sig.reshape(B, C, 1, 1) * used_sig + sig
    return x_normed * new_sig + new_mu


if __name__ == "__main__":
    B, C, H, W = 2, 4, 16, 16
    eps = 1e-6
    mix_weight = 1.0

    key = jax.random.PRNGKey(0)
    kx, kmu, ksig = jax.random.split(key, 3)

    x = jax.random.normal(kx, (B, C, H, W), dtype=jnp.float32)
    # Parameters as in __init__: filled with 0.1, shape (1, C, 1, 1) -> (C,)
    adv_mean_std = jnp.full((C,), 0.1, dtype=jnp.float32)
    adv_std_std = jnp.full((C,), 0.1, dtype=jnp.float32)
    # torch.randn(mu.size()) / torch.randn(sig.size()) -> deterministic noise
    noise_mu = jax.random.normal(kmu, (B, C), dtype=jnp.float32)
    noise_sig = jax.random.normal(ksig, (B, C), dtype=jnp.float32)

    out = advstyle_forward(x, adv_mean_std, adv_std_std, noise_mu, noise_sig,
                           eps=eps, mix_weight=mix_weight, apply_mix=True)
    out = jax.block_until_ready(out)

    ref = _reference_jax(x, adv_mean_std, adv_std_std, noise_mu, noise_sig,
                         eps=eps, mix_weight=mix_weight)
    assert out.shape == (B, C, H, W)
    assert jnp.allclose(out, ref, atol=1e-4, rtol=1e-4), "mismatch vs reference"

    # Identity path (coin-flip < 0.5).
    ident = advstyle_forward(x, adv_mean_std, adv_std_std, noise_mu, noise_sig,
                             eps=eps, mix_weight=mix_weight, apply_mix=False)
    assert jnp.array_equal(ident, x)

    print("KERNEL_OK")
</pallas_src>

<mosaic_0001>
module attributes {stable_mosaic.version = 11 : i64} {
  func.func @_stats_kernel(%arg0: i32, %arg1: i32, %arg2: memref<8x256xf32, #tpu.memory_space<vmem>>, %arg3: memref<8x1xf32, #tpu.memory_space<vmem>>, %arg4: memref<8x1xf32, #tpu.memory_space<vmem>>) attributes {dimension_semantics = [#tpu.dimension_semantics<parallel>, #tpu.dimension_semantics<arbitrary>], iteration_bounds = array<i64: 1, 1>, scalar_prefetch = 0 : i64, scratch_operands = 0 : i64, tpu.core_type = #tpu.core_type<tc>, window_params = [{transform_indices = @transform_0, window_bounds = array<i64: 8, 256>}, {transform_indices = @transform_1, window_bounds = array<i64: 8, 1>}, {transform_indices = @transform_2, window_bounds = array<i64: 8, 1>}]} {
    %c0_i32 = arith.constant 0 : i32
    %0 = arith.cmpi eq, %arg1, %c0_i32 : i32
    %1 = arith.extui %0 : i1 to i32
    %c0_i32_0 = arith.constant 0 : i32
    %2 = arith.cmpi ne, %1, %c0_i32_0 : i32
    scf.if %2 {
      %cst_11 = arith.constant 0.000000e+00 : f32
      %15 = vector.broadcast %cst_11 : f32 to vector<8x1xf32>
      %c0_12 = arith.constant 0 : index
      %c0_13 = arith.constant 0 : index
      %16 = vector.load %arg3[%c0_12, %c0_13] : memref<8x1xf32, #tpu.memory_space<vmem>>, vector<8x1xf32>
      tpu.vector_store %arg3[%c0_12, %c0_13], %15 {strides = array<i32>} : memref<8x1xf32, #tpu.memory_space<vmem>>, vector<8x1xf32>,
      %cst_14 = arith.constant 0.000000e+00 : f32
      %17 = vector.broadcast %cst_14 : f32 to vector<8x1xf32>
      %c0_15 = arith.constant 0 : index
      %c0_16 = arith.constant 0 : index
      %18 = vector.load %arg4[%c0_15, %c0_16] : memref<8x1xf32, #tpu.memory_space<vmem>>, vector<8x1xf32>
      tpu.vector_store %arg4[%c0_15, %c0_16], %17 {strides = array<i32>} : memref<8x1xf32, #tpu.memory_space<vmem>>, vector<8x1xf32>,
    } else {
    }
    %c0 = arith.constant 0 : index
    %c0_1 = arith.constant 0 : index
    %3 = vector.load %arg2[%c0, %c0_1] : memref<8x256xf32, #tpu.memory_space<vmem>>, vector<8x256xf32>
    %c0_2 = arith.constant 0 : index
    %c0_3 = arith.constant 0 : index
    %4 = vector.load %arg3[%c0_2, %c0_3] : memref<8x1xf32, #tpu.memory_space<vmem>>, vector<8x1xf32>
    %cst = arith.constant dense<0.000000e+00> : vector<8xf32>
    %5 = vector.multi_reduction <add>, %3, %cst [1] : vector<8x256xf32> to vector<8xf32>
    %6 = vector.shape_cast %5 : vector<8xf32> to vector<8x1xf32>
    %7 = arith.addf %4, %6 : vector<8x1xf32>
    %c0_4 = arith.constant 0 : index
    %c0_5 = arith.constant 0 : index
    %8 = vector.load %arg3[%c0_4, %c0_5] : memref<8x1xf32, #tpu.memory_space<vmem>>, vector<8x1xf32>
    tpu.vector_store %arg3[%c0_4, %c0_5], %7 {strides = array<i32>} : memref<8x1xf32, #tpu.memory_space<vmem>>, vector<8x1xf32>,
    %c0_6 = arith.constant 0 : index
    %c0_7 = arith.constant 0 : index
    %9 = vector.load %arg4[%c0_6, %c0_7] : memref<8x1xf32, #tpu.memory_space<vmem>>, vector<8x1xf32>
    %10 = arith.mulf %3, %3 : vector<8x256xf32>
    %cst_8 = arith.constant dense<0.000000e+00> : vector<8xf32>
    %11 = vector.multi_reduction <add>, %10, %cst_8 [1] : vector<8x256xf32> to vector<8xf32>
    %12 = vector.shape_cast %11 : vector<8xf32> to vector<8x1xf32>
    %13 = arith.addf %9, %12 : vector<8x1xf32>
    %c0_9 = arith.constant 0 : index
    %c0_10 = arith.constant 0 : index
    %14 = vector.load %arg4[%c0_9, %c0_10] : memref<8x1xf32, #tpu.memory_space<vmem>>, vector<8x1xf32>
    tpu.vector_store %arg4[%c0_9, %c0_10], %13 {strides = array<i32>} : memref<8x1xf32, #tpu.memory_space<vmem>>, vector<8x1xf32>,
    return
  }
  func.func @transform_0(%arg0: i32, %arg1: i32) -> (i32, i32) {
    %c0_i32 = arith.constant 0 : i32
    return %arg0, %arg1 : i32, i32
  }
  func.func @transform_1(%arg0: i32, %arg1: i32) -> (i32, i32) {
    %c0_i32 = arith.constant 0 : i32
    %c0_i32_0 = arith.constant 0 : i32
    return %arg0, %c0_i32 : i32, i32
  }
  func.func @transform_2(%arg0: i32, %arg1: i32) -> (i32, i32) {
    %c0_i32 = arith.constant 0 : i32
    %c0_i32_0 = arith.constant 0 : i32
    return %arg0, %c0_i32 : i32, i32
  }
}

</mosaic_0001>

<bundles_post_ra>
// kernel: tpu_custom_call.1
= control target key start
LH: loop header
LB: loop body
LE: loop exit
PB: predicated region body
PF: predicated region fallthrough
CT: control target
= control target key end

     0   :  { %8 = vsyncpa [#allocation3], 0  ;;  %s81_s9 = smov [#allocation2]   ;;  %s132_s0 = inlined_call_operand.hbm [shape: f32[8,256], index: 0, kind: input, shape index: {}]   ;;  %s133_s1 = inlined_call_operand.vmem [shape: f32[8,1], index: 1, kind: output, shape index: {0}]   ;;  %s134_s2 = inlined_call_operand.vmem [shape: f32[8,1], index: 2, kind: output, shape index: {1}]  }
   0x1   :  { %s15_s10 = sshll.u32 %s81_s9, 4  ;;  %s57_s13 = scalar_lea.hbm %s132_s0, 256  ;;  %s16_s10 = int_to_ptr.vmem [resolvable:$true] %s15_s10 }
   0x2   :  { %p58_p0 = scmp.ne.s32.totalorder %s132_s0, %s57_s13  ;;  %p61_p1 = scmp.lt.u32.totalorder %s57_s13, %s132_s0 }
   0x4   :  { %p63_p2 = pnand %p61_p1, %p58_p0 }
   0x6   :  { %66 = shalt.err (!%p63_p2)
}
   0x7   :  { %s67_s18 = scalar_lea.vmem %s16_s10, 256  ;;  %p72_p4 = scmp.lt.s32.totalorder %s16_s10, %s16_s10 }
   0x8   :  { %p68_p3 = scmp.ne.s32.totalorder %s16_s10, %s67_s18  ;;  %p73_p5 = scmp.lt.s32.totalorder %s67_s18, %s67_s18 }
   0xa   :  { %p74_p6 = por %p73_p5, %p72_p4 }
   0xc   :  { %p75_p7 = pnand %p74_p6, %p68_p3 }
   0xe   :  { %78 = shalt.err (!%p75_p7)
}
   0xf   :  { %18 = dma.hbm_to_vmem [thread:$0]  %s132_s0, 256, %s16_s10, [#allocation3]  }
  0x10   :  { %79 = dma.done.wait [#allocation3], 256  }
  0x11   :  { %80 = vsyncadd [#allocation3], 4294967040  ;;  %vm26_vm0 = vcmask 7168   ;;  %v82_v0 = vmov 0.0   ;;  %v29_v1 = vld [vmem:[#allocation2] sm:$0xff]  ;;  %v30_v2 = vld [vmem:[#allocation2 + $0x8] sm:$0xff] }
  0x12   :  { %27 = vst.msk [vmem:[%s133_s1] sm:$0xff] %vm26_vm0, %v82_v0  ;;  %28 = vst.msk [vmem:[%s134_s2] sm:$0xff] %vm26_vm0, %v82_v0  ;;  %v32_v3 = vadd.f32 %v30_v2, %v29_v1  ;;  %v39_v4 = vmul.f32 %v29_v1, %v29_v1  ;;  %v40_v5 = vmul.f32 %v30_v2, %v30_v2 }
  0x14   :  { %33 = vadd.xlane.f32.xlu0 %v32_v3  ;;  %v41_v6 = vadd.f32 %v40_v5, %v39_v4 }
  0x18   :  { %42 = vadd.xlane.f32.xlu0 %v41_v6 }
  0x19   :  { %v31_v7 = vld [vmem:[%s133_s1] sm:$0xff] }
  0x1a   :  { %v38_v10 = vld [vmem:[%s134_s2] sm:$0xff] }
  0xa1   :  { %v34_v8 = vpop.xlane.xlu0 %33 }
  0xa2   :  { %v35_v9 = vadd.f32 %v34_v8, %v31_v7 }
  0xa4   :  { %37 = vst.msk [vmem:[%s133_s1] sm:$0xff] %vm26_vm0, %v35_v9 }
  0xa5   :  { %v43_v11 = vpop.xlane.xlu0 %42 }
  0xa6   :  { %v44_v12 = vadd.f32 %v43_v11, %v38_v10 }
  0xa8   :  { %45 = vst.msk [vmem:[%s134_s2] sm:$0xff] %vm26_vm0, %v44_v12 }
  0xa9   :  { %54 = vsyncpa [#allocation3], 1 }

</bundles_post_ra>
